<compile_context>
chip_gen: v7x
topology: tpu7x:2x2x1
jax: 0.10.0
libtpu: 0.0.40
codegen_flags: <defaults>
</compile_context>

<pallas_src>
import functools
import math

import jax
import jax.numpy as jnp
from jax.experimental import pallas as pl
from jax.experimental.pallas import tpu as pltpu


_LN_EPS = 1e-5  # torch.nn.LayerNorm default


def _layernorm(x):
    """LayerNorm(elementwise_affine=False): (x - mean) / sqrt(var + eps), f32 math."""
    mu = jnp.mean(x, axis=-1, keepdims=True)
    xc = x - mu
    var = jnp.mean(xc * xc, axis=-1, keepdims=True)
    return xc * jax.lax.rsqrt(var + _LN_EPS)


def _gelu_tanh(x):
    # TODO(synk): nn.GELU() defaults to the erf-exact form; the tanh approximation is used here
    # (max abs deviation ~1e-3) because lax.erf lowering inside Mosaic is not guaranteed.
    c = math.sqrt(2.0 / math.pi)
    return 0.5 * x * (1.0 + jnp.tanh(c * (x + 0.044715 * (x * x * x))))


# ----------------------------------------------------------------------------------------------
# Fused TransformerBlock kernel: x -> x + MHA(LN1(x)) -> (+ MLP(LN2(.)))
# Operates on a 2D slab of rows (bb * T, C); the wrapper flattens (B, T, C) -> (B*T, C).
# ----------------------------------------------------------------------------------------------
def _block_kernel(x_ref, wqkv_ref, wfc_ref, bfc_ref, wproj_ref, bproj_ref, o_ref,
                  *, num_heads, seq_len):
    f32 = jnp.float32
    bf16 = jnp.bfloat16

    x = x_ref[...]                                   # (R, C) f32, R = bb * T
    R, C = x.shape
    T = seq_len
    bb = R // T
    hs = C // num_heads

    # Causal bias built in-kernel once (no (T,T) mask DMA; finite value, not -inf).
    row = jax.lax.broadcasted_iota(jnp.int32, (T, T), 0)
    col = jax.lax.broadcasted_iota(jnp.int32, (T, T), 1)
    causal_bias = jnp.where(row >= col, jnp.float32(0.0), jnp.float32(-1e30))

    # ---- LN1 + fused QKV projection: single lane-dense bf16 MXU matmul for all heads ----
    xn = _layernorm(x).astype(bf16)
    qkv = jnp.dot(xn, wqkv_ref[...], preferred_element_type=f32)      # (R, 3C) = [Q | K | V]

    # Split into a leading (bb*H) batch axis with static slices (1/sqrt(hs) already in W_q).
    def heads_of(part):
        pieces = []
        for b in range(bb):
            for h in range(num_heads):
                r0, c0 = b * T, part * C + h * hs
                pieces.append(qkv[r0:r0 + T, c0:c0 + hs])             # (T, hs)
        return jnp.stack(pieces, axis=0).astype(bf16)                 # (bb*H, T, hs)

    q = heads_of(0)
    k = heads_of(1)
    v = heads_of(2)

    # ---- all heads (and batch rows) in ONE batched contraction; softmax math in f32 ----
    # == jnp.einsum('btd,bsd->bts', q, k): contract head dim, no explicit k.T transpose.
    att = jax.lax.dot_general(q, k, (((2,), (2,)), ((0,), (0,))),
                              preferred_element_type=f32)             # (bb*H, T, T)
    att = att + causal_bias[None, :, :]
    m = jnp.max(att, axis=-1, keepdims=True)
    p = jnp.exp(att - m)
    denom = jnp.sum(p, axis=-1, keepdims=True)
    scores = p * pl.reciprocal(denom, approx=True)                    # EUP vrcp, ~free
    # == jnp.einsum('bts,bsd->btd', scores, v)
    ctx = jax.lax.dot_general(scores.astype(bf16), v, (((2,), (1,)), ((0,), (0,))),
                              preferred_element_type=f32)             # (bb*H, T, hs)

    # Merge heads back into a (R, C) slab (head-major columns, matching the PyTorch view()).
    slabs = []
    for b in range(bb):
        slabs.append(jnp.concatenate(
            [ctx[b * num_heads + h] for h in range(num_heads)], axis=-1))   # (T, C)
    attn_out = jnp.concatenate(slabs, axis=0)                          # (R, C)

    x1 = x + attn_out

    # ---- LN2 + MLP: fc -> (dropout = identity in eval) -> GELU -> proj ----
    hn = _layernorm(x1).astype(bf16)
    a = jnp.dot(hn, wfc_ref[...], preferred_element_type=f32) + bfc_ref[...]
    a = _gelu_tanh(a)
    mlp = jnp.dot(a.astype(bf16), wproj_ref[...], preferred_element_type=f32) + bproj_ref[...]

    # Single lane-dense store for the whole block output.
    o_ref[...] = (x1 + mlp).astype(o_ref.dtype)


def _transformer_block(x2d, bp, *, num_heads, seq_len, batch_block):
    R, C = x2d.shape                                  # R = B * T
    rows_per_step = batch_block * seq_len
    assert R % rows_per_step == 0
    grid = (R // rows_per_step,)
    kernel = functools.partial(_block_kernel, num_heads=num_heads, seq_len=seq_len)
    return pl.pallas_call(
        kernel,
        out_shape=jax.ShapeDtypeStruct((R, C), jnp.float32),
        grid_spec=pltpu.PrefetchScalarGridSpec(
            num_scalar_prefetch=0,
            grid=grid,
            in_specs=[
                pl.BlockSpec((rows_per_step, C), lambda i: (i, 0)),
                pl.BlockSpec(bp["w_qkv_t"].shape, lambda i: (0, 0)),   # resident weights
                pl.BlockSpec(bp["w_fc_t"].shape, lambda i: (0, 0)),
                pl.BlockSpec(bp["b_fc"].shape, lambda i: (0, 0)),
                pl.BlockSpec(bp["w_proj_t"].shape, lambda i: (0, 0)),
                pl.BlockSpec(bp["b_proj"].shape, lambda i: (0, 0)),
            ],
            out_specs=pl.BlockSpec((rows_per_step, C), lambda i: (i, 0)),
        ),
        compiler_params=pltpu.CompilerParams(dimension_semantics=("parallel",)),
    )(x2d, bp["w_qkv_t"], bp["w_fc_t"], bp["b_fc"], bp["w_proj_t"], bp["b_proj"])


# ----------------------------------------------------------------------------------------------
# Final LayerNorm + lm_head kernel (vocab padded to a multiple of 128 for a lane-dense store).
# ----------------------------------------------------------------------------------------------
def _lm_head_kernel(x_ref, w_ref, o_ref):
    xn = _layernorm(x_ref[...]).astype(jnp.bfloat16)
    logits = jnp.dot(xn, w_ref[...], preferred_element_type=jnp.float32)
    o_ref[...] = logits.astype(o_ref.dtype)


def _lm_head(x2d, w_lm_t_padded):
    R, C = x2d.shape
    Vp = w_lm_t_padded.shape[1]
    return pl.pallas_call(
        _lm_head_kernel,
        out_shape=jax.ShapeDtypeStruct((R, Vp), jnp.float32),
        grid_spec=pltpu.PrefetchScalarGridSpec(
            num_scalar_prefetch=0,
            grid=(1,),
            in_specs=[pl.BlockSpec((R, C), lambda i: (i, 0)),
                      pl.BlockSpec((C, Vp), lambda i: (0, 0))],
            out_specs=pl.BlockSpec((R, Vp), lambda i: (i, 0)),
        ),
        compiler_params=pltpu.CompilerParams(dimension_semantics=("arbitrary",)),
    )(x2d, w_lm_t_padded)


# ----------------------------------------------------------------------------------------------
# Parameter preparation (static, done once in the wrapper — free):
#   * qkv weight transposed, columns re-ordered [Q_allheads | K_allheads | V_allheads],
#     softmax scale folded into the Q columns, cast to bf16
#   * fc / proj / lm_head weights transposed + bf16, biases kept f32 as (1, N)
#   * lm_head columns zero-padded to a multiple of 128
# ----------------------------------------------------------------------------------------------
def prepare_params(raw, num_heads):
    C = raw["embed"].shape[1]
    hs = C // num_heads
    blocks = []
    for blk in raw["blocks"]:
        w_t = jnp.transpose(blk["w_qkv"])                               # (C, 3C), cols [h: q|k|v]
        w_t = w_t.reshape(C, num_heads, 3, hs).transpose(0, 2, 1, 3)    # -> [Q | K | V], head-major
        w_t = w_t.reshape(C, 3 * C)
        w_t = w_t.at[:, :C].multiply(hs ** -0.5)                        # fold scale into Q
        blocks.append(dict(
            w_qkv_t=w_t.astype(jnp.bfloat16),
            w_fc_t=jnp.transpose(blk["w_fc"]).astype(jnp.bfloat16),     # (C, fan*C)
            b_fc=blk["b_fc"].reshape(1, -1).astype(jnp.float32),
            w_proj_t=jnp.transpose(blk["w_proj"]).astype(jnp.bfloat16), # (fan*C, C)
            b_proj=blk["b_proj"].reshape(1, -1).astype(jnp.float32),
        ))
    V = raw["w_lm"].shape[0]
    Vp = ((V + 127) // 128) * 128
    w_lm_t = jnp.pad(jnp.transpose(raw["w_lm"]), ((0, 0), (0, Vp - V)))
    return dict(
        embed=raw["embed"].astype(jnp.float32),
        pos_embed=raw["pos_embed"].astype(jnp.float32),
        blocks=blocks,
        w_lm_t=w_lm_t.astype(jnp.bfloat16),
    )


def gpt_forward(params, ids, targets=None, *, num_heads, context_length, vocab_size,
                batch_block=None):
    """GPTModel.forward: ids (B, T) int32 -> (logits (B, T, vocab), loss)."""
    B, T = ids.shape
    assert T <= context_length
    C = params["embed"].shape[1]

    # TODO(synk): token/position embedding gather stays in plain JAX (data-dependent gather;
    # a Pallas version would need scalar-prefetch + pl.Element row gathers, not the hot path).
    x = params["embed"][ids] + params["pos_embed"][:T][None, :, :]
    x2d = x.reshape(B * T, C).astype(jnp.float32)

    bb = B if batch_block is None else batch_block
    assert B % bb == 0
    for bp in params["blocks"]:
        x2d = _transformer_block(x2d, bp, num_heads=num_heads, seq_len=T, batch_block=bb)

    logits2d = _lm_head(x2d, params["w_lm_t"])[:, :vocab_size]
    logits = logits2d.reshape(B, T, vocab_size)

    if targets is None:
        loss = None
    else:
        # Cross-entropy in plain JAX (not a hot path for this spec).
        logp = jax.nn.log_softmax(logits2d, axis=-1)
        loss = -jnp.mean(jnp.take_along_axis(logp, targets.reshape(B * T, 1), axis=-1))
    return logits, loss


# ----------------------------------------------------------------------------------------------
# Pure-JAX reference replicating the PyTorch forward (matmul_dtype=float32 == faithful;
# matmul_dtype=bfloat16 == numerics-matched to the kernel for a tight check).
# ----------------------------------------------------------------------------------------------
def reference_forward(raw, ids, *, num_heads, matmul_dtype):
    f32 = jnp.float32

    def mm(a, b):
        return jnp.dot(a.astype(matmul_dtype), b.astype(matmul_dtype),
                       preferred_element_type=f32).astype(f32)

    def ln(x):
        mu = x.mean(-1, keepdims=True)
        var = ((x - mu) ** 2).mean(-1, keepdims=True)
        return (x - mu) / jnp.sqrt(var + _LN_EPS)

    B, T = ids.shape
    C = raw["embed"].shape[1]
    hs = C // num_heads
    x = (raw["embed"][ids] + raw["pos_embed"][:T][None, :, :]).astype(f32)
    mask = jnp.tril(jnp.ones((T, T)))

    for blk in raw["blocks"]:
        xn = ln(x)
        qkv = mm(xn.reshape(B * T, C), blk["w_qkv"].T).reshape(B, T, 3 * C)
        projs = qkv.reshape(B, T, num_heads, 3 * hs).transpose(0, 2, 1, 3)     # (B,H,T,3hs)
        q, k, v = projs[..., :hs], projs[..., hs:2 * hs], projs[..., 2 * hs:]
        att = jnp.einsum("bhtd,bhsd->bhts", q.astype(matmul_dtype), k.astype(matmul_dtype),
                         preferred_element_type=f32) * (hs ** -0.5)
        att = jnp.where(mask[None, None] == 0, -jnp.inf, att)
        scores = jax.nn.softmax(att.astype(f32), axis=-1)
        ctx = jnp.einsum("bhts,bhsd->bhtd", scores.astype(matmul_dtype), v.astype(matmul_dtype),
                         preferred_element_type=f32)
        x = x + ctx.transpose(0, 2, 1, 3).reshape(B, T, C)

        hn = ln(x)
        a = mm(hn.reshape(B * T, C), blk["w_fc"].T) + blk["b_fc"][None, :]
        a = _gelu_tanh(a)
        mo = mm(a, blk["w_proj"].T) + blk["b_proj"][None, :]
        x = x + mo.reshape(B, T, C)

    return mm(ln(x).reshape(B * T, C), raw["w_lm"].T).reshape(B, T, -1)


if __name__ == "__main__":
    # Small GPT: context=16, d_model=32, 4 heads, 2 layers, vocab=65, batch=2, seq=8.
    context_length, d_model, num_heads, n_layers, vocab_size = 16, 32, 4, 2, 65
    fan = 4
    B, T = 2, 8

    key = jax.random.PRNGKey(0)
    k_embed, k_pos, k_lm, k_ids, key = jax.random.split(key, 5)

    blocks = []
    for _ in range(n_layers):
        k1, k2, k3, k4, k5, key = jax.random.split(key, 6)
        blocks.append(dict(
            w_qkv=jax.random.normal(k1, (3 * d_model, d_model), jnp.float32) * d_model ** -0.5,
            w_fc=jax.random.normal(k2, (fan * d_model, d_model), jnp.float32) * d_model ** -0.5,
            b_fc=jax.random.normal(k3, (fan * d_model,), jnp.float32) * 0.05,
            w_proj=jax.random.normal(k4, (d_model, fan * d_model), jnp.float32)
                   * (fan * d_model) ** -0.5,
            b_proj=jax.random.normal(k5, (d_model,), jnp.float32) * 0.05,
        ))
    raw = dict(
        embed=jax.random.normal(k_embed, (vocab_size, d_model), jnp.float32),
        pos_embed=jax.random.normal(k_pos, (context_length, d_model), jnp.float32),
        blocks=blocks,
        w_lm=jax.random.normal(k_lm, (vocab_size, d_model), jnp.float32) * d_model ** -0.5,
    )
    ids = jax.random.randint(k_ids, (B, T), 0, vocab_size, dtype=jnp.int32)

    params = prepare_params(raw, num_heads)
    fwd = jax.jit(functools.partial(gpt_forward, num_heads=num_heads,
                                    context_length=context_length, vocab_size=vocab_size))
    logits, loss = fwd(params, ids)
    logits = jax.block_until_ready(logits)

    assert logits.shape == (B, T, vocab_size)
    assert loss is None

    # Tight check vs a numerics-matched reference (bf16 matmul operands, f32 accumulation).
    ref_bf16 = reference_forward(raw, ids, num_heads=num_heads, matmul_dtype=jnp.bfloat16)
    err_bf16 = float(jnp.max(jnp.abs(logits - ref_bf16)))
    assert err_bf16 < 7.5e-2, f"kernel vs bf16-matched reference: max abs err {err_bf16}"

    # Loose check vs the PyTorch-faithful f32 reference (difference is bf16 rounding only).
    ref_f32 = reference_forward(raw, ids, num_heads=num_heads, matmul_dtype=jnp.float32)
    err_f32 = float(jnp.max(jnp.abs(logits - ref_f32)))
    assert err_f32 < 0.35, f"kernel vs f32 reference: max abs err {err_f32}"

    print("KERNEL_OK")
</pallas_src>

<mosaic_0001>
module attributes {stable_mosaic.version = 11 : i64} {
  func.func @_lm_head_kernel(%arg0: i32, %arg1: memref<16x32xf32, #tpu.memory_space<vmem>>, %arg2: memref<32x128xbf16, #tpu.memory_space<vmem>>, %arg3: memref<16x128xf32, #tpu.memory_space<vmem>>) attributes {dimension_semantics = [#tpu.dimension_semantics<arbitrary>], iteration_bounds = array<i64: 1>, scalar_prefetch = 0 : i64, scratch_operands = 0 : i64, tpu.core_type = #tpu.core_type<tc>, window_params = [{transform_indices = @transform_0, window_bounds = array<i64: 16, 32>}, {pipeline_mode = #tpu.pipeline_mode<synchronous>, transform_indices = @transform_1, window_bounds = array<i64: 32, 128>}, {transform_indices = @transform_2, window_bounds = array<i64: 16, 128>}]} {
    %c0 = arith.constant 0 : index
    %c0_0 = arith.constant 0 : index
    %0 = vector.load %arg1[%c0, %c0_0] : memref<16x32xf32, #tpu.memory_space<vmem>>, vector<16x32xf32>
    %cst = arith.constant dense<0.000000e+00> : vector<16xf32>
    %1 = vector.multi_reduction <add>, %0, %cst [1] : vector<16x32xf32> to vector<16xf32>
    %2 = vector.shape_cast %1 : vector<16xf32> to vector<16x1xf32>
    %cst_1 = arith.constant 3.200000e+01 : f32
    %3 = vector.broadcast %cst_1 : f32 to vector<16x1xf32>
    %4 = arith.divf %2, %3 : vector<16x1xf32>
    %5 = vector.broadcast %4 : vector<16x1xf32> to vector<16x32xf32>
    %6 = arith.subf %0, %5 : vector<16x32xf32>
    %7 = arith.mulf %6, %6 : vector<16x32xf32>
    %cst_2 = arith.constant dense<0.000000e+00> : vector<16xf32>
    %8 = vector.multi_reduction <add>, %7, %cst_2 [1] : vector<16x32xf32> to vector<16xf32>
    %9 = vector.shape_cast %8 : vector<16xf32> to vector<16x1xf32>
    %cst_3 = arith.constant 3.200000e+01 : f32
    %10 = vector.broadcast %cst_3 : f32 to vector<16x1xf32>
    %11 = arith.divf %9, %10 : vector<16x1xf32>
    %cst_4 = arith.constant 9.99999974E-6 : f32
    %12 = vector.broadcast %cst_4 : f32 to vector<16x1xf32>
    %13 = arith.addf %11, %12 : vector<16x1xf32>
    %14 = math.rsqrt %13 : vector<16x1xf32>
    %15 = vector.broadcast %14 : vector<16x1xf32> to vector<16x32xf32>
    %16 = arith.mulf %6, %15 : vector<16x32xf32>
    %17 = arith.truncf %16 : vector<16x32xf32> to vector<16x32xbf16>
    %c0_5 = arith.constant 0 : index
    %c0_6 = arith.constant 0 : index
    %18 = vector.load %arg2[%c0_5, %c0_6] : memref<32x128xbf16, #tpu.memory_space<vmem>>, vector<32x128xbf16>
    %cst_7 = arith.constant dense<0.000000e+00> : vector<16x128xf32>
    %19 = tpu.matmul %17, %18, %cst_7 {dimension_numbers = #tpu.dot_dimension_numbers<[1], [0], [0], [1], [0, 0, 1, 1], [], []>} : vector<16x32xbf16>, vector<32x128xbf16>, vector<16x128xf32> -> vector<16x128xf32>
    %c0_8 = arith.constant 0 : index
    %c0_9 = arith.constant 0 : index
    %20 = vector.load %arg3[%c0_8, %c0_9] : memref<16x128xf32, #tpu.memory_space<vmem>>, vector<16x128xf32>
    tpu.vector_store %arg3[%c0_8, %c0_9], %19 {strides = array<i32>} : memref<16x128xf32, #tpu.memory_space<vmem>>, vector<16x128xf32>,
    return
  }
  func.func @transform_0(%arg0: i32) -> (i32, i32) {
    %c0_i32 = arith.constant 0 : i32
    %c0_i32_0 = arith.constant 0 : i32
    return %arg0, %c0_i32 : i32, i32
  }
  func.func @transform_1(%arg0: i32) -> (i32, i32) {
    %c0_i32 = arith.constant 0 : i32
    %c0_i32_0 = arith.constant 0 : i32
    %c0_i32_1 = arith.constant 0 : i32
    return %c0_i32, %c0_i32_0 : i32, i32
  }
  func.func @transform_2(%arg0: i32) -> (i32, i32) {
    %c0_i32 = arith.constant 0 : i32
    %c0_i32_0 = arith.constant 0 : i32
    return %arg0, %c0_i32 : i32, i32
  }
}

module attributes {stable_mosaic.version = 11 : i64} {
  func.func @_block_kernel(%arg0: i32, %arg1: memref<16x32xf32, #tpu.memory_space<vmem>>, %arg2: memref<32x96xbf16, #tpu.memory_space<vmem>>, %arg3: memref<32x128xbf16, #tpu.memory_space<vmem>>, %arg4: memref<1x128xf32, #tpu.memory_space<vmem>>, %arg5: memref<128x32xbf16, #tpu.memory_space<vmem>>, %arg6: memref<1x32xf32, #tpu.memory_space<vmem>>, %arg7: memref<16x32xf32, #tpu.memory_space<vmem>>) attributes {dimension_semantics = [#tpu.dimension_semantics<parallel>], iteration_bounds = array<i64: 1>, scalar_prefetch = 0 : i64, scratch_operands = 0 : i64, tpu.core_type = #tpu.core_type<tc>, window_params = [{transform_indices = @transform_0, window_bounds = array<i64: 16, 32>}, {pipeline_mode = #tpu.pipeline_mode<synchronous>, transform_indices = @transform_1, window_bounds = array<i64: 32, 96>}, {pipeline_mode = #tpu.pipeline_mode<synchronous>, transform_indices = @transform_2, window_bounds = array<i64: 32, 128>}, {pipeline_mode = #tpu.pipeline_mode<synchronous>, transform_indices = @transform_3, window_bounds = array<i64: 1, 128>}, {pipeline_mode = #tpu.pipeline_mode<synchronous>, transform_indices = @transform_4, window_bounds = array<i64: 128, 32>}, {pipeline_mode = #tpu.pipeline_mode<synchronous>, transform_indices = @transform_5, window_bounds = array<i64: 1, 32>}, {transform_indices = @transform_6, window_bounds = array<i64: 16, 32>}]} {
    %c0 = arith.constant 0 : index
    %c0_0 = arith.constant 0 : index
    %0 = vector.load %arg1[%c0, %c0_0] : memref<16x32xf32, #tpu.memory_space<vmem>>, vector<16x32xf32>
    %1 = tpu.iota {dimensions = array<i32: 0>} : vector<8x8xi32>
    %2 = tpu.iota {dimensions = array<i32: 1>} : vector<8x8xi32>
    %3 = arith.cmpi sge, %1, %2 : vector<8x8xi32>
    %cst = arith.constant 0.000000e+00 : f32
    %cst_1 = arith.constant -1.000000e+30 : f32
    %4 = vector.broadcast %cst : f32 to vector<8x8xf32>
    %5 = vector.broadcast %cst_1 : f32 to vector<8x8xf32>
    %6 = arith.select %3, %4, %5 : vector<8x8xi1>, vector<8x8xf32>
    %cst_2 = arith.constant dense<0.000000e+00> : vector<16xf32>
    %7 = vector.multi_reduction <add>, %0, %cst_2 [1] : vector<16x32xf32> to vector<16xf32>
    %8 = vector.shape_cast %7 : vector<16xf32> to vector<16x1xf32>
    %cst_3 = arith.constant 3.200000e+01 : f32
    %9 = vector.broadcast %cst_3 : f32 to vector<16x1xf32>
    %10 = arith.divf %8, %9 : vector<16x1xf32>
    %11 = vector.broadcast %10 : vector<16x1xf32> to vector<16x32xf32>
    %12 = arith.subf %0, %11 : vector<16x32xf32>
    %13 = arith.mulf %12, %12 : vector<16x32xf32>
    %cst_4 = arith.constant dense<0.000000e+00> : vector<16xf32>
    %14 = vector.multi_reduction <add>, %13, %cst_4 [1] : vector<16x32xf32> to vector<16xf32>
    %15 = vector.shape_cast %14 : vector<16xf32> to vector<16x1xf32>
    %cst_5 = arith.constant 3.200000e+01 : f32
    %16 = vector.broadcast %cst_5 : f32 to vector<16x1xf32>
    %17 = arith.divf %15, %16 : vector<16x1xf32>
    %cst_6 = arith.constant 9.99999974E-6 : f32
    %18 = vector.broadcast %cst_6 : f32 to vector<16x1xf32>
    %19 = arith.addf %17, %18 : vector<16x1xf32>
    %20 = math.rsqrt %19 : vector<16x1xf32>
    %21 = vector.broadcast %20 : vector<16x1xf32> to vector<16x32xf32>
    %22 = arith.mulf %12, %21 : vector<16x32xf32>
    %23 = arith.truncf %22 : vector<16x32xf32> to vector<16x32xbf16>
    %c0_7 = arith.constant 0 : index
    %c0_8 = arith.constant 0 : index
    %24 = vector.load %arg2[%c0_7, %c0_8] : memref<32x96xbf16, #tpu.memory_space<vmem>>, vector<32x96xbf16>
    %cst_9 = arith.constant dense<0.000000e+00> : vector<16x96xf32>
    %25 = tpu.matmul %23, %24, %cst_9 {dimension_numbers = #tpu.dot_dimension_numbers<[1], [0], [0], [1], [0, 0, 1, 1], [], []>} : vector<16x32xbf16>, vector<32x96xbf16>, vector<16x96xf32> -> vector<16x96xf32>
    %26 = vector.extract_strided_slice %25 {offsets = [0, 0], sizes = [8, 8], strides = [1, 1]} : vector<16x96xf32> to vector<8x8xf32>
    %27 = vector.extract_strided_slice %25 {offsets = [0, 8], sizes = [8, 8], strides = [1, 1]} : vector<16x96xf32> to vector<8x8xf32>
    %28 = vector.extract_strided_slice %25 {offsets = [0, 16], sizes = [8, 8], strides = [1, 1]} : vector<16x96xf32> to vector<8x8xf32>
    %29 = vector.extract_strided_slice %25 {offsets = [0, 24], sizes = [8, 8], strides = [1, 1]} : vector<16x96xf32> to vector<8x8xf32>
    %30 = vector.extract_strided_slice %25 {offsets = [8, 0], sizes = [8, 8], strides = [1, 1]} : vector<16x96xf32> to vector<8x8xf32>
    %31 = vector.extract_strided_slice %25 {offsets = [8, 8], sizes = [8, 8], strides = [1, 1]} : vector<16x96xf32> to vector<8x8xf32>
    %32 = vector.extract_strided_slice %25 {offsets = [8, 16], sizes = [8, 8], strides = [1, 1]} : vector<16x96xf32> to vector<8x8xf32>
    %33 = vector.extract_strided_slice %25 {offsets = [8, 24], sizes = [8, 8], strides = [1, 1]} : vector<16x96xf32> to vector<8x8xf32>
    %34 = vector.shape_cast %26 : vector<8x8xf32> to vector<1x8x8xf32>
    %35 = vector.shape_cast %27 : vector<8x8xf32> to vector<1x8x8xf32>
    %36 = vector.shape_cast %28 : vector<8x8xf32> to vector<1x8x8xf32>
    %37 = vector.shape_cast %29 : vector<8x8xf32> to vector<1x8x8xf32>
    %38 = vector.shape_cast %30 : vector<8x8xf32> to vector<1x8x8xf32>
    %39 = vector.shape_cast %31 : vector<8x8xf32> to vector<1x8x8xf32>
    %40 = vector.shape_cast %32 : vector<8x8xf32> to vector<1x8x8xf32>
    %41 = vector.shape_cast %33 : vector<8x8xf32> to vector<1x8x8xf32>
    %42 = tpu.concatenate %34, %35, %36, %37, %38, %39, %40, %41 in 0 : vector<1x8x8xf32>, vector<1x8x8xf32>, vector<1x8x8xf32>, vector<1x8x8xf32>, vector<1x8x8xf32>, vector<1x8x8xf32>, vector<1x8x8xf32>, vector<1x8x8xf32> -> vector<8x8x8xf32>
    %43 = arith.truncf %42 : vector<8x8x8xf32> to vector<8x8x8xbf16>
    %44 = vector.extract_strided_slice %25 {offsets = [0, 32], sizes = [8, 8], strides = [1, 1]} : vector<16x96xf32> to vector<8x8xf32>
    %45 = vector.extract_strided_slice %25 {offsets = [0, 40], sizes = [8, 8], strides = [1, 1]} : vector<16x96xf32> to vector<8x8xf32>
    %46 = vector.extract_strided_slice %25 {offsets = [0, 48], sizes = [8, 8], strides = [1, 1]} : vector<16x96xf32> to vector<8x8xf32>
    %47 = vector.extract_strided_slice %25 {offsets = [0, 56], sizes = [8, 8], strides = [1, 1]} : vector<16x96xf32> to vector<8x8xf32>
    %48 = vector.extract_strided_slice %25 {offsets = [8, 32], sizes = [8, 8], strides = [1, 1]} : vector<16x96xf32> to vector<8x8xf32>
    %49 = vector.extract_strided_slice %25 {offsets = [8, 40], sizes = [8, 8], strides = [1, 1]} : vector<16x96xf32> to vector<8x8xf32>
    %50 = vector.extract_strided_slice %25 {offsets = [8, 48], sizes = [8, 8], strides = [1, 1]} : vector<16x96xf32> to vector<8x8xf32>
    %51 = vector.extract_strided_slice %25 {offsets = [8, 56], sizes = [8, 8], strides = [1, 1]} : vector<16x96xf32> to vector<8x8xf32>
    %52 = vector.shape_cast %44 : vector<8x8xf32> to vector<1x8x8xf32>
    %53 = vector.shape_cast %45 : vector<8x8xf32> to vector<1x8x8xf32>
    %54 = vector.shape_cast %46 : vector<8x8xf32> to vector<1x8x8xf32>
    %55 = vector.shape_cast %47 : vector<8x8xf32> to vector<1x8x8xf32>
    %56 = vector.shape_cast %48 : vector<8x8xf32> to vector<1x8x8xf32>
    %57 = vector.shape_cast %49 : vector<8x8xf32> to vector<1x8x8xf32>
    %58 = vector.shape_cast %50 : vector<8x8xf32> to vector<1x8x8xf32>
    %59 = vector.shape_cast %51 : vector<8x8xf32> to vector<1x8x8xf32>
    %60 = tpu.concatenate %52, %53, %54, %55, %56, %57, %58, %59 in 0 : vector<1x8x8xf32>, vector<1x8x8xf32>, vector<1x8x8xf32>, vector<1x8x8xf32>, vector<1x8x8xf32>, vector<1x8x8xf32>, vector<1x8x8xf32>, vector<1x8x8xf32> -> vector<8x8x8xf32>
    %61 = arith.truncf %60 : vector<8x8x8xf32> to vector<8x8x8xbf16>
    %62 = vector.extract_strided_slice %25 {offsets = [0, 64], sizes = [8, 8], strides = [1, 1]} : vector<16x96xf32> to vector<8x8xf32>
    %63 = vector.extract_strided_slice %25 {offsets = [0, 72], sizes = [8, 8], strides = [1, 1]} : vector<16x96xf32> to vector<8x8xf32>
    %64 = vector.extract_strided_slice %25 {offsets = [0, 80], sizes = [8, 8], strides = [1, 1]} : vector<16x96xf32> to vector<8x8xf32>
    %65 = vector.extract_strided_slice %25 {offsets = [0, 88], sizes = [8, 8], strides = [1, 1]} : vector<16x96xf32> to vector<8x8xf32>
    %66 = vector.extract_strided_slice %25 {offsets = [8, 64], sizes = [8, 8], strides = [1, 1]} : vector<16x96xf32> to vector<8x8xf32>
    %67 = vector.extract_strided_slice %25 {offsets = [8, 72], sizes = [8, 8], strides = [1, 1]} : vector<16x96xf32> to vector<8x8xf32>
    %68 = vector.extract_strided_slice %25 {offsets = [8, 80], sizes = [8, 8], strides = [1, 1]} : vector<16x96xf32> to vector<8x8xf32>
    %69 = vector.extract_strided_slice %25 {offsets = [8, 88], sizes = [8, 8], strides = [1, 1]} : vector<16x96xf32> to vector<8x8xf32>
    %70 = vector.shape_cast %62 : vector<8x8xf32> to vector<1x8x8xf32>
    %71 = vector.shape_cast %63 : vector<8x8xf32> to vector<1x8x8xf32>
    %72 = vector.shape_cast %64 : vector<8x8xf32> to vector<1x8x8xf32>
    %73 = vector.shape_cast %65 : vector<8x8xf32> to vector<1x8x8xf32>
    %74 = vector.shape_cast %66 : vector<8x8xf32> to vector<1x8x8xf32>
    %75 = vector.shape_cast %67 : vector<8x8xf32> to vector<1x8x8xf32>
    %76 = vector.shape_cast %68 : vector<8x8xf32> to vector<1x8x8xf32>
    %77 = vector.shape_cast %69 : vector<8x8xf32> to vector<1x8x8xf32>
    %78 = tpu.concatenate %70, %71, %72, %73, %74, %75, %76, %77 in 0 : vector<1x8x8xf32>, vector<1x8x8xf32>, vector<1x8x8xf32>, vector<1x8x8xf32>, vector<1x8x8xf32>, vector<1x8x8xf32>, vector<1x8x8xf32>, vector<1x8x8xf32> -> vector<8x8x8xf32>
    %79 = arith.truncf %78 : vector<8x8x8xf32> to vector<8x8x8xbf16>
    %cst_10 = arith.constant dense<0.000000e+00> : vector<8x8x8xf32>
    %80 = tpu.matmul %43, %61, %cst_10 {dimension_numbers = #tpu.dot_dimension_numbers<[2], [2], [1], [1], [0, 0, 0, 1, 1, 1], [0], [0]>} : vector<8x8x8xbf16>, vector<8x8x8xbf16>, vector<8x8x8xf32> -> vector<8x8x8xf32>
    %81 = vector.shape_cast %6 : vector<8x8xf32> to vector<1x8x8xf32>
    %82 = vector.broadcast %81 : vector<1x8x8xf32> to vector<8x8x8xf32>
    %83 = arith.addf %80, %82 : vector<8x8x8xf32>
    %cst_11 = arith.constant dense<0xFF800000> : vector<8x8xf32>
    %84 = vector.multi_reduction <maximumf>, %83, %cst_11 [2] : vector<8x8x8xf32> to vector<8x8xf32>
    %85 = vector.shape_cast %84 : vector<8x8xf32> to vector<8x8x1xf32>
    %86 = vector.broadcast %85 : vector<8x8x1xf32> to vector<8x8x8xf32>
    %87 = arith.subf %83, %86 : vector<8x8x8xf32>
    %88 = math.exp %87 : vector<8x8x8xf32>
    %cst_12 = arith.constant dense<0.000000e+00> : vector<8x8xf32>
    %89 = vector.multi_reduction <add>, %88, %cst_12 [2] : vector<8x8x8xf32> to vector<8x8xf32>
    %90 = vector.shape_cast %89 : vector<8x8xf32> to vector<8x8x1xf32>
    %91 = tpu.reciprocal %90 {approx = true} : vector<8x8x1xf32> -> vector<8x8x1xf32>
    %92 = vector.broadcast %91 : vector<8x8x1xf32> to vector<8x8x8xf32>
    %93 = arith.mulf %88, %92 : vector<8x8x8xf32>
    %94 = arith.truncf %93 : vector<8x8x8xf32> to vector<8x8x8xbf16>
    %cst_13 = arith.constant dense<0.000000e+00> : vector<8x8x8xf32>
    %95 = tpu.matmul %94, %79, %cst_13 {dimension_numbers = #tpu.dot_dimension_numbers<[2], [1], [1], [2], [0, 0, 0, 1, 1, 2], [0], [0]>} : vector<8x8x8xbf16>, vector<8x8x8xbf16>, vector<8x8x8xf32> -> vector<8x8x8xf32>
    %96 = vector.extract_strided_slice %95 {offsets = [0, 0, 0], sizes = [1, 8, 8], strides = [1, 1, 1]} : vector<8x8x8xf32> to vector<1x8x8xf32>
    %97 = vector.shape_cast %96 : vector<1x8x8xf32> to vector<8x8xf32>
    %98 = vector.extract_strided_slice %95 {offsets = [1, 0, 0], sizes = [1, 8, 8], strides = [1, 1, 1]} : vector<8x8x8xf32> to vector<1x8x8xf32>
    %99 = vector.shape_cast %98 : vector<1x8x8xf32> to vector<8x8xf32>
    %100 = vector.extract_strided_slice %95 {offsets = [2, 0, 0], sizes = [1, 8, 8], strides = [1, 1, 1]} : vector<8x8x8xf32> to vector<1x8x8xf32>
    %101 = vector.shape_cast %100 : vector<1x8x8xf32> to vector<8x8xf32>
    %102 = vector.extract_strided_slice %95 {offsets = [3, 0, 0], sizes = [1, 8, 8], strides = [1, 1, 1]} : vector<8x8x8xf32> to vector<1x8x8xf32>
    %103 = vector.shape_cast %102 : vector<1x8x8xf32> to vector<8x8xf32>
    %104 = tpu.concatenate %97, %99, %101, %103 in 1 : vector<8x8xf32>, vector<8x8xf32>, vector<8x8xf32>, vector<8x8xf32> -> vector<8x32xf32>
    %105 = vector.extract_strided_slice %95 {offsets = [4, 0, 0], sizes = [1, 8, 8], strides = [1, 1, 1]} : vector<8x8x8xf32> to vector<1x8x8xf32>
    %106 = vector.shape_cast %105 : vector<1x8x8xf32> to vector<8x8xf32>
    %107 = vector.extract_strided_slice %95 {offsets = [5, 0, 0], sizes = [1, 8, 8], strides = [1, 1, 1]} : vector<8x8x8xf32> to vector<1x8x8xf32>
    %108 = vector.shape_cast %107 : vector<1x8x8xf32> to vector<8x8xf32>
    %109 = vector.extract_strided_slice %95 {offsets = [6, 0, 0], sizes = [1, 8, 8], strides = [1, 1, 1]} : vector<8x8x8xf32> to vector<1x8x8xf32>
    %110 = vector.shape_cast %109 : vector<1x8x8xf32> to vector<8x8xf32>
    %111 = vector.extract_strided_slice %95 {offsets = [7, 0, 0], sizes = [1, 8, 8], strides = [1, 1, 1]} : vector<8x8x8xf32> to vector<1x8x8xf32>
    %112 = vector.shape_cast %111 : vector<1x8x8xf32> to vector<8x8xf32>
    %113 = tpu.concatenate %106, %108, %110, %112 in 1 : vector<8x8xf32>, vector<8x8xf32>, vector<8x8xf32>, vector<8x8xf32> -> vector<8x32xf32>
    %114 = tpu.concatenate %104, %113 in 0 : vector<8x32xf32>, vector<8x32xf32> -> vector<16x32xf32>
    %115 = arith.addf %0, %114 : vector<16x32xf32>
    %cst_14 = arith.constant dense<0.000000e+00> : vector<16xf32>
    %116 = vector.multi_reduction <add>, %115, %cst_14 [1] : vector<16x32xf32> to vector<16xf32>
    %117 = vector.shape_cast %116 : vector<16xf32> to vector<16x1xf32>
    %cst_15 = arith.constant 3.200000e+01 : f32
    %118 = vector.broadcast %cst_15 : f32 to vector<16x1xf32>
    %119 = arith.divf %117, %118 : vector<16x1xf32>
    %120 = vector.broadcast %119 : vector<16x1xf32> to vector<16x32xf32>
    %121 = arith.subf %115, %120 : vector<16x32xf32>
    %122 = arith.mulf %121, %121 : vector<16x32xf32>
    %cst_16 = arith.constant dense<0.000000e+00> : vector<16xf32>
    %123 = vector.multi_reduction <add>, %122, %cst_16 [1] : vector<16x32xf32> to vector<16xf32>
    %124 = vector.shape_cast %123 : vector<16xf32> to vector<16x1xf32>
    %cst_17 = arith.constant 3.200000e+01 : f32
    %125 = vector.broadcast %cst_17 : f32 to vector<16x1xf32>
    %126 = arith.divf %124, %125 : vector<16x1xf32>
    %cst_18 = arith.constant 9.99999974E-6 : f32
    %127 = vector.broadcast %cst_18 : f32 to vector<16x1xf32>
    %128 = arith.addf %126, %127 : vector<16x1xf32>
    %129 = math.rsqrt %128 : vector<16x1xf32>
    %130 = vector.broadcast %129 : vector<16x1xf32> to vector<16x32xf32>
    %131 = arith.mulf %121, %130 : vector<16x32xf32>
    %132 = arith.truncf %131 : vector<16x32xf32> to vector<16x32xbf16>
    %c0_19 = arith.constant 0 : index
    %c0_20 = arith.constant 0 : index
    %133 = vector.load %arg3[%c0_19, %c0_20] : memref<32x128xbf16, #tpu.memory_space<vmem>>, vector<32x128xbf16>
    %cst_21 = arith.constant dense<0.000000e+00> : vector<16x128xf32>
    %134 = tpu.matmul %132, %133, %cst_21 {dimension_numbers = #tpu.dot_dimension_numbers<[1], [0], [0], [1], [0, 0, 1, 1], [], []>} : vector<16x32xbf16>, vector<32x128xbf16>, vector<16x128xf32> -> vector<16x128xf32>
    %c0_22 = arith.constant 0 : index
    %c0_23 = arith.constant 0 : index
    %135 = vector.load %arg4[%c0_22, %c0_23] : memref<1x128xf32, #tpu.memory_space<vmem>>, vector<1x128xf32>
    %136 = vector.broadcast %135 : vector<1x128xf32> to vector<16x128xf32>
    %137 = arith.addf %134, %136 : vector<16x128xf32>
    %cst_24 = arith.constant 5.000000e-01 : f32
    %138 = vector.broadcast %cst_24 : f32 to vector<16x128xf32>
    %139 = arith.mulf %138, %137 : vector<16x128xf32>
    %140 = arith.mulf %137, %137 : vector<16x128xf32>
    %141 = arith.mulf %140, %137 : vector<16x128xf32>
    %cst_25 = arith.constant 4.471500e-02 : f32
    %142 = vector.broadcast %cst_25 : f32 to vector<16x128xf32>
    %143 = arith.mulf %142, %141 : vector<16x128xf32>
    %144 = arith.addf %137, %143 : vector<16x128xf32>
    %cst_26 = arith.constant 0.797884583 : f32
    %145 = vector.broadcast %cst_26 : f32 to vector<16x128xf32>
    %146 = arith.mulf %145, %144 : vector<16x128xf32>
    %147 = math.tanh %146 : vector<16x128xf32>
    %cst_27 = arith.constant 1.000000e+00 : f32
    %148 = vector.broadcast %cst_27 : f32 to vector<16x128xf32>
    %149 = arith.addf %148, %147 : vector<16x128xf32>
    %150 = arith.mulf %139, %149 : vector<16x128xf32>
    %151 = arith.truncf %150 : vector<16x128xf32> to vector<16x128xbf16>
    %c0_28 = arith.constant 0 : index
    %c0_29 = arith.constant 0 : index
    %152 = vector.load %arg5[%c0_28, %c0_29] : memref<128x32xbf16, #tpu.memory_space<vmem>>, vector<128x32xbf16>
    %cst_30 = arith.constant dense<0.000000e+00> : vector<16x32xf32>
    %153 = tpu.matmul %151, %152, %cst_30 {dimension_numbers = #tpu.dot_dimension_numbers<[1], [0], [0], [1], [0, 0, 1, 1], [], []>} : vector<16x128xbf16>, vector<128x32xbf16>, vector<16x32xf32> -> vector<16x32xf32>
    %c0_31 = arith.constant 0 : index
    %c0_32 = arith.constant 0 : index
    %154 = vector.load %arg6[%c0_31, %c0_32] : memref<1x32xf32, #tpu.memory_space<vmem>>, vector<1x32xf32>
    %155 = vector.broadcast %154 : vector<1x32xf32> to vector<16x32xf32>
    %156 = arith.addf %153, %155 : vector<16x32xf32>
    %157 = arith.addf %115, %156 : vector<16x32xf32>
    %c0_33 = arith.constant 0 : index
    %c0_34 = arith.constant 0 : index
    %158 = vector.load %arg7[%c0_33, %c0_34] : memref<16x32xf32, #tpu.memory_space<vmem>>, vector<16x32xf32>
    tpu.vector_store %arg7[%c0_33, %c0_34], %157 {strides = array<i32>} : memref<16x32xf32, #tpu.memory_space<vmem>>, vector<16x32xf32>,
    return
  }
  func.func @transform_0(%arg0: i32) -> (i32, i32) {
    %c0_i32 = arith.constant 0 : i32
    %c0_i32_0 = arith.constant 0 : i32
    return %arg0, %c0_i32 : i32, i32
  }
  func.func @transform_1(%arg0: i32) -> (i32, i32) {
    %c0_i32 = arith.constant 0 : i32
    %c0_i32_0 = arith.constant 0 : i32
    %c0_i32_1 = arith.constant 0 : i32
    return %c0_i32, %c0_i32_0 : i32, i32
  }
  func.func @transform_2(%arg0: i32) -> (i32, i32) {
    %c0_i32 = arith.constant 0 : i32
    %c0_i32_0 = arith.constant 0 : i32
    %c0_i32_1 = arith.constant 0 : i32
    return %c0_i32, %c0_i32_0 : i32, i32
  }
  func.func @transform_3(%arg0: i32) -> (i32, i32) {
    %c0_i32 = arith.constant 0 : i32
    %c0_i32_0 = arith.constant 0 : i32
    %c0_i32_1 = arith.constant 0 : i32
    return %c0_i32, %c0_i32_0 : i32, i32
  }
  func.func @transform_4(%arg0: i32) -> (i32, i32) {
    %c0_i32 = arith.constant 0 : i32
    %c0_i32_0 = arith.constant 0 : i32
    %c0_i32_1 = arith.constant 0 : i32
    return %c0_i32, %c0_i32_0 : i32, i32
  }
  func.func @transform_5(%arg0: i32) -> (i32, i32) {
    %c0_i32 = arith.constant 0 : i32
    %c0_i32_0 = arith.constant 0 : i32
    %c0_i32_1 = arith.constant 0 : i32
    return %c0_i32, %c0_i32_0 : i32, i32
  }
  func.func @transform_6(%arg0: i32) -> (i32, i32) {
    %c0_i32 = arith.constant 0 : i32
    %c0_i32_0 = arith.constant 0 : i32
    return %arg0, %c0_i32 : i32, i32
  }
}

</mosaic_0001>

<bundles_post_ra>
// kernel: gpt_forward.5
= control target key start
LH: loop header
LB: loop body
LE: loop exit
PB: predicated region body
PF: predicated region fallthrough
CT: control target
= control target key end

     0   :  { %vm14_vm0 = vcmask 261120   ;;  %v131_v14 = vmov 0.0   ;;  %vm132_vm1 = vmmov 0   ;;  %s171_s0 = inlined_call_operand.vmem [shape: f32[16,32], index: 0, kind: input, shape index: {}]   ;;  %s172_s1 = inlined_call_operand.vmem [shape: bf16[32,128], index: 1, kind: input, shape index: {}]   ;;  %s173_s2 = inlined_call_operand.vmem [shape: f32[16,128], index: 2, kind: output, shape index: {}]  }
   0x1   :  { %v12_v0 = vld [vmem:[%s171_s0] sm:$0xff]  ;;  %v13_v1 = vld [vmem:[%s171_s0 + $0x8] sm:$0xff]  ;;  %115 = vmatprep.subr.bf16.mxu0 %v131_v14  ;;  %119 = vmatprep.mubr.msk.bf16.mxu0 %vm132_vm1, %v131_v14 }
   0x2   :  { %v15_v2 = vsel %vm14_vm0, %v12_v0, 0.0  ;;  %v18_v3 = vsel %vm14_vm0, %v13_v1, 0.0  ;;  %v125_v15 = vld [vmem:[%s172_s1] sm:$0xff]   ;;  %v126_v16 = vld [vmem:[%s172_s1 + $0x8] sm:$0xff]  }
   0x3   :  { %16 = vadd.xlane.f32.xlu0 %v15_v2  ;;  %116 = vmatpush3.bf16.msra.mxu0 %v125_v15 }
   0x4   :  { %117 = vmatprep.subr.bf16.mxu0 %v131_v14 }
   0x7   :  { %19 = vadd.xlane.f32.xlu0 %v18_v3  ;;  %118 = vmatpush3.bf16.msra.mxu0 %v126_v16 }
  0x90   :  { %v17_v4 = vpop.xlane.xlu0 %16 }
  0x91   :  { %v22_v5 = vmul.f32 0.03125, %v17_v4 }
  0x93   :  { %v24_v6 = vsub.f32 %v12_v0, %v22_v5 }
  0x94   :  { %v20_v7 = vpop.xlane.xlu0 %19 }
  0x95   :  { %v23_v8 = vmul.f32 0.03125, %v20_v7  ;;  %v26_v9 = vmul.f32 %v24_v6, %v24_v6 }
  0x97   :  { %v25_v10 = vsub.f32 %v13_v1, %v23_v8  ;;  %v28_v11 = vsel %vm14_vm0, %v26_v9, 0.0 }
  0x98   :  { %29 = vadd.xlane.f32.xlu1 %v28_v11 }
  0x99   :  { %v27_v12 = vmul.f32 %v25_v10, %v25_v10 }
  0x9b   :  { %v31_v13 = vsel %vm14_vm0, %v27_v12, 0.0 }
  0x9c   :  { %32 = vadd.xlane.f32.xlu1 %v31_v13 }
 0x125   :  { %v30_v17 = vpop.xlane.xlu1 %29 }
 0x126   :  { %v34_v18 = vmul.f32 0.03125, %v30_v17 }
 0x128   :  { %v36_v19 = vadd.f32 1e-05, %v34_v18 }
 0x129   :  { %v33_v20 = vpop.xlane.xlu1 %32 }
 0x12a   :  { %v35_v21 = vmul.f32 0.03125, %v33_v20  ;;  %127 = vrsqrt.f32 %v36_v19 }
 0x12c   :  { %v37_v22 = vadd.f32 1e-05, %v35_v21 }
 0x12e   :  { %129 = vrsqrt.f32 %v37_v22 }
 0x134   :  { %v128_v23 = vpop.eup %127 }
 0x135   :  { %v40_v25 = vmul.f32 %v128_v23, %v24_v6 }
 0x138   :  { %v130_v24 = vpop.eup %129 }
 0x139   :  { %v41_v26 = vmul.f32 %v130_v24, %v25_v10 }
 0x13b   :  { %v42_v27 = vpack.c.bf16 %v41_v26, %v40_v25 }
 0x13d   :  { %120 = vmatmul.mubr.msk.bf16.vlgmr.msra.gmra.mrb[0].mxu0 %vm14_vm0, %v42_v27 }
 0x210   :  { %v96_v28 = vpop.f32.mrb[0].mxu0 }
 0x211   :  { %103 = vst [vmem:[%s173_s2] sm:$0xff] %v96_v28  ;;  %v121_v29 = vpop.f32.mrb[1].mxu0 }
 0x212   :  { %v99_v30 = vpop.f32.mrb[2].mxu0 }
 0x213   :  { %104 = vst [vmem:[%s173_s2 + $0x8] sm:$0xff] %v99_v30  ;;  %v122_v31 = vpop.f32.mrb[3].mxu0 }

// kernel: gpt_forward.3
= control target key start
LH: loop header
LB: loop body
LE: loop exit
PB: predicated region body
PF: predicated region fallthrough
CT: control target
= control target key end

     0   :  { %vm32_vm0 = vcmask 261120   ;;  %v1568_v14 = vmov 0.0   ;;  %vm1569_vm1 = vmmov 0   ;;  %s1571_s28 = smov 120   ;;  %s1572_s29 = smov 104   ;;  %vm152_vm2 = vcmask 64512   ;;  %s1912_s0 = inlined_call_operand.vmem [shape: f32[16,32], index: 0, kind: input, shape index: {}]   ;;  %s1913_s1 = inlined_call_operand.vmem [shape: bf16[32,96], index: 1, kind: input, shape index: {}]   ;;  %s1914_s2 = inlined_call_operand.vmem [shape: bf16[32,128], index: 2, kind: input, shape index: {}]   ;;  %s1915_s4 = inlined_call_operand.vmem [shape: bf16[128,32], index: 4, kind: input, shape index: {}]   ;;  %s1916_s3 = inlined_call_operand.vmem [shape: f32[1,128], index: 3, kind: input, shape index: {}]   ;;  %s1917_s5 = inlined_call_operand.vmem [shape: f32[1,32], index: 5, kind: input, shape index: {}]   ;;  %s1918_s6 = inlined_call_operand.vmem [shape: f32[16,32], index: 6, kind: output, shape index: {}]  }
   0x1   :  { %v1617_v0 = vld [vmem:[%s1912_s0] sm:$0xff]  ;;  %v1622_v1 = vld [vmem:[%s1912_s0 + $0x8] sm:$0xff]  ;;  %1369 = vmatprep.subr.bf16.mxu1 %v1568_v14  ;;  %1373 = vmatprep.mubr.msk.bf16.mxu1 %vm1569_vm1, %v1568_v14  ;;  %s1573_s30 = smov 96   ;;  %v26_v62 = vlaneseq  ;;  %s1575_s7 = smov 64   ;;  %vm643_vm4 = vcmask 1043456   ;;  %vm1036_vm5 = vcmask 130048  }
   0x2   :  { %v33_v2 = vsel %vm32_vm0, %v1617_v0, 0.0  ;;  %v36_v3 = vsel %vm32_vm0, %v1622_v1, 0.0  ;;  %v1512_v15 = vld [vmem:[%s1913_s1] sm:$0xff]   ;;  %1395 = vmatprep.subr.bf16.mxu0 %v1568_v14  ;;  %1397 = vmatprep.mubr.msk.bf16.mxu0 %vm1569_vm1, %v1568_v14  ;;  %v1513_v16 = vld [vmem:[%s1913_s1 + $0x8] sm:$0xff]   ;;  %s1570_s1 = smov 112   ;;  %s1576_s8 = smov 8  }
   0x3   :  { %34 = vadd.xlane.f32.xlu0 %v33_v2  ;;  %1370 = vmatpush3.bf16.msra.mxu1 %v1512_v15  ;;  %v27_v63 = vshrl.u32 %v26_v62, 7  ;;  %v29_v2 = vand.u32 127, %v26_v62  ;;  %s1577_s9 = smov 16   ;;  %s1578_s10 = smov 24   ;;  %vm1038_vm6 = vcmask 195584  }
   0x4   :  { %1371 = vmatprep.subr.bf16.mxu1 %v1568_v14 }
   0x5   :  { %vm30_vm3 = vcmp.ge.s32.totalorder %v27_v63, %v29_v2 }
   0x7   :  { %37 = vadd.xlane.f32.xlu0 %v36_v3  ;;  %1372 = vmatpush3.bf16.msra.mxu1 %v1513_v16  ;;  %v1574_v3 = vmov -1e+30  }
   0x8   :  { %1377 = vmatprep.subr.bf16.mxu1 %v1568_v14 }
  0x90   :  { %v35_v4 = vpop.xlane.xlu0 %34 }
  0x91   :  { %v40_v5 = vmul.f32 0.03125, %v35_v4  ;;  %v31_v4 = vsel %vm30_vm3, 0.0, %v1574_v3 }
  0x93   :  { %v42_v6 = vsub.f32 %v1617_v0, %v40_v5 }
  0x94   :  { %v38_v7 = vpop.xlane.xlu0 %37 }
  0x95   :  { %v41_v8 = vmul.f32 0.03125, %v38_v7  ;;  %v44_v9 = vmul.f32 %v42_v6, %v42_v6 }
  0x97   :  { %v43_v10 = vsub.f32 %v1622_v1, %v41_v8  ;;  %v46_v11 = vsel %vm32_vm0, %v44_v9, 0.0 }
  0x98   :  { %47 = vadd.xlane.f32.xlu1 %v46_v11 }
  0x99   :  { %v45_v12 = vmul.f32 %v43_v10, %v43_v10 }
  0x9b   :  { %v49_v13 = vsel %vm32_vm0, %v45_v12, 0.0 }
  0x9c   :  { %50 = vadd.xlane.f32.xlu1 %v49_v13 }
 0x125   :  { %v48_v17 = vpop.xlane.xlu1 %47 }
 0x126   :  { %v52_v18 = vmul.f32 0.03125, %v48_v17 }
 0x128   :  { %v54_v19 = vadd.f32 1e-05, %v52_v18 }
 0x129   :  { %v51_v20 = vpop.xlane.xlu1 %50 }
 0x12a   :  { %v53_v21 = vmul.f32 0.03125, %v51_v20  ;;  %1524 = vrsqrt.f32 %v54_v19 }
 0x12c   :  { %v55_v22 = vadd.f32 1e-05, %v53_v21 }
 0x12e   :  { %1526 = vrsqrt.f32 %v55_v22 }
 0x134   :  { %v1525_v23 = vpop.eup %1524 }
 0x135   :  { %v58_v25 = vmul.f32 %v1525_v23, %v42_v6 }
 0x138   :  { %v1527_v24 = vpop.eup %1526 }
 0x139   :  { %v59_v26 = vmul.f32 %v1527_v24, %v43_v10 }
 0x13b   :  { %v60_v27 = vpack.c.bf16 %v59_v26, %v58_v25 }
 0x13d   :  { %1374 = vmatmul.mubr.msk.bf16.vlgmr.msra.gmra.mrb[0].mxu1 %vm32_vm0, %v60_v27 }
 0x13e   :  { %1379 = vmatprep.mubr.msk.bf16.mxu1 %vm1569_vm1, %v1568_v14 }
 0x210   :  { %v114_v28 = vpop.f32.mrb[0].mxu1 }
 0x211   :  { %125 = vrot.lane.b32.xlu1 %v114_v28, %s1570_s1  ;;  %122 = vrot.lane.b32.xlu0 %v114_v28, %s1571_s28  ;;  %v1375_v29 = vpop.f32.mrb[1].mxu1  ;;  %v1649_v32 = vpack.c.bf16 %v114_v28, %v114_v28 }
 0x212   :  { %v117_v30 = vpop.f32.mrb[2].mxu1 }
 0x213   :  { %v1376_v31 = vpop.f32.mrb[3].mxu1  ;;  %v1660_v40 = vpack.c.bf16 %v117_v30, %v117_v30 }
 0x215   :  { %128 = vrot.lane.b32.xlu1 %v114_v28, %s1572_s29  ;;  %135 = vrot.lane.b32.xlu0 %v117_v30, %s1570_s1 }
 0x219   :  { %150 = vrot.lane.b32.xlu0 %v1649_v32, %s1573_s30  ;;  %132 = vrot.lane.b32.xlu1 %v117_v30, %s1571_s28 }
 0x21d   :  { %138 = vrot.lane.b32.xlu1 %v117_v30, %s1572_s29 }
 0x283   :  { %v126_v33 = vpop.permute.xlu1 %125  ;;  %v123_v34 = vpop.permute.xlu0 %122 }
 0x284   :  { %v1652_v35 = vpack.c.bf16 %v126_v33, %v126_v33  ;;  %v1654_v36 = vpack.c.bf16 %v123_v34, %v123_v34 }
 0x286   :  { %249 = vrot.lane.b32.xlu0 %v1652_v35, %s1573_s30  ;;  %200 = vrot.lane.b32.xlu1 %v1654_v36, %s1573_s30 }
 0x287   :  { %v129_v37 = vpop.permute.xlu1 %128  ;;  %v136_v38 = vpop.permute.xlu0 %135 }
 0x288   :  { %v1658_v39 = vpack.c.bf16 %v129_v37, %v129_v37  ;;  %v1664_v43 = vpack.c.bf16 %v136_v38, %v136_v38 }
 0x28a   :  { %298 = vrot.lane.b32.xlu1 %v1658_v39, %s1573_s30  ;;  %347 = vrot.lane.b32.xlu0 %v1660_v40, %s1573_s30 }
 0x28b   :  { %v151_v41 = vpop.permute.xlu0 %150  ;;  %v133_v42 = vpop.permute.xlu1 %132 }
 0x28c   :  { %v157_v44 = vsel %vm152_vm2, %v151_v41, 0  ;;  %v1667_v45 = vpack.c.bf16 %v133_v42, %v133_v42 }
 0x28d   :  { %1378 = vmatpush3.bf16.xpose.msra.mxu1 %v157_v44 }
 0x28e   :  { %396 = vrot.lane.b32.xlu1 %v1667_v45, %s1573_s30  ;;  %445 = vrot.lane.b32.xlu0 %v1664_v43, %s1573_s30 }
 0x28f   :  { %v139_v46 = vpop.permute.xlu1 %138  ;;  %1383 = vmatprep.subr.bf16.mxu1 %v1568_v14 }
 0x290   :  { %v1672_v47 = vpack.c.bf16 %v139_v46, %v139_v46 }
 0x292   :  { %494 = vrot.lane.b32.xlu1 %v1672_v47, %s1573_s30 }
 0x294   :  { %1380 = vmatmul.mubr.msk.bf16.vlgmr.msra.gmra.mrb[4].mxu1 %vm152_vm2, %v1649_v32 }
 0x295   :  { %1385 = vmatprep.mubr.msk.bf16.mxu1 %vm1569_vm1, %v1568_v14 }
 0x2f8   :  { %v201_v48 = vpop.permute.xlu1 %200  ;;  %v250_v52 = vpop.permute.xlu0 %249 }
 0x2f9   :  { %v206_v49 = vsel %vm152_vm2, %v201_v48, 0  ;;  %v255_v53 = vsel %vm152_vm2, %v250_v52, 0 }
 0x2fa   :  { %1384 = vmatpush3.bf16.xpose.msra.mxu1 %v206_v49 }
 0x2fb   :  { %1389 = vmatprep.subr.bf16.mxu1 %v1568_v14 }
 0x2fc   :  { %v299_v50 = vpop.permute.xlu1 %298  ;;  %v348_v56 = vpop.permute.xlu0 %347 }
 0x2fd   :  { %v304_v51 = vsel %vm152_vm2, %v299_v50, 0  ;;  %v353_v57 = vsel %vm152_vm2, %v348_v56, 0 }
 0x2fe   :  { %1396 = vmatpush3.bf16.xpose.msra.mxu0 %v304_v51 }
 0x2ff   :  { %1407 = vmatprep.subr.bf16.mxu0 %v1568_v14 }
 0x300   :  { %v397_v54 = vpop.permute.xlu1 %396  ;;  %v446_v60 = vpop.permute.xlu0 %445 }
 0x301   :  { %1386 = vmatmul.mubr.msk.bf16.vlgmr.msra.gmra.mrb[8].mxu1 %vm152_vm2, %v1654_v36  ;;  %v402_v55 = vsel %vm152_vm2, %v397_v54, 0  ;;  %v451_v61 = vsel %vm152_vm2, %v446_v60, 0 }
 0x302   :  { %1390 = vmatpush3.bf16.xpose.msra.mxu1 %v255_v53  ;;  %1391 = vmatprep.mubr.msk.bf16.mxu1 %vm1569_vm1, %v1568_v14 }
 0x303   :  { %1401 = vmatprep.subr.bf16.mxu1 %v1568_v14 }
 0x304   :  { %v495_v58 = vpop.permute.xlu1 %494 }
 0x305   :  { %1398 = vmatmul.mubr.msk.bf16.vlgmr.msra.gmra.mrb[0].mxu0 %vm152_vm2, %v1658_v39  ;;  %v500_v59 = vsel %vm152_vm2, %v495_v58, 0 }
 0x306   :  { %1408 = vmatpush3.bf16.xpose.msra.mxu0 %v402_v55  ;;  %1409 = vmatprep.mubr.msk.bf16.mxu0 %vm1569_vm1, %v1568_v14 }
 0x307   :  { %1419 = vmatprep.subr.bf16.mxu0 %v1568_v14 }
 0x309   :  { %1392 = vmatmul.mubr.msk.bf16.vlgmr.msra.gmra.mrb[12].mxu1 %vm152_vm2, %v1652_v35 }
 0x30a   :  { %1402 = vmatpush3.bf16.xpose.msra.mxu1 %v353_v57  ;;  %1403 = vmatprep.mubr.msk.bf16.mxu1 %vm1569_vm1, %v1568_v14 }
 0x30b   :  { %1413 = vmatprep.subr.bf16.mxu1 %v1568_v14 }
 0x30d   :  { %1410 = vmatmul.mubr.msk.bf16.vlgmr.msra.gmra.mrb[4].mxu0 %vm152_vm2, %v1667_v45 }
 0x30e   :  { %1420 = vmatpush3.bf16.xpose.msra.mxu0 %v500_v59  ;;  %1421 = vmatprep.mubr.msk.bf16.mxu0 %vm1569_vm1, %v1568_v14 }
 0x30f   :  { %1431 = vmatprep.subr.bf16.mxu0 %v1568_v14 }
 0x311   :  { %1404 = vmatmul.mubr.msk.bf16.vlgmr.msra.gmra.mrb[16].mxu1 %vm152_vm2, %v1660_v40 }
 0x312   :  { %1414 = vmatpush3.bf16.xpose.msra.mxu1 %v451_v61  ;;  %1415 = vmatprep.mubr.msk.bf16.mxu1 %vm1569_vm1, %v1568_v14 }
 0x313   :  { %1425 = vmatprep.subr.bf16.mxu1 %v1568_v14 }
 0x315   :  { %1422 = vmatmul.mubr.msk.bf16.vlgmr.msra.gmra.mrb[8].mxu0 %vm152_vm2, %v1672_v47 }
 0x316   :  { %1433 = vmatprep.mubr.msk.bf16.mxu0 %vm1569_vm1, %v1568_v14 }
 0x319   :  { %1416 = vmatmul.mubr.msk.bf16.vlgmr.msra.gmra.mrb[20].mxu1 %vm152_vm2, %v1664_v43 }
 0x31a   :  { %1427 = vmatprep.mubr.msk.bf16.mxu1 %vm1569_vm1, %v1568_v14 }
 0x367   :  { %v193_v5 = vpop.f32.mrb[4].mxu1 }
 0x368   :  { %v194_v6 = vadd.f32 %v193_v5, %v31_v4  ;;  %v1381_v7 = vpop.f32.mrb[5].mxu1 }
 0x369   :  { %v196_v8 = vpop.f32.mrb[6].mxu1 }
 0x36a   :  { %v1382_v9 = vpop.f32.mrb[7].mxu1  ;;  %v542_v10 = vsel %vm152_vm2, %v194_v6, -inf }
 0x36b   :  { %543 = vmax.xlane.f32.xlu0 %v542_v10 }
 0x3d4   :  { %v242_v11 = vpop.f32.mrb[8].mxu1 }
 0x3d5   :  { %v243_v12 = vadd.f32 %v242_v11, %v31_v4  ;;  %v1387_v13 = vpop.f32.mrb[9].mxu1 }
 0x3d6   :  { %v245_v15 = vpop.f32.mrb[10].mxu1 }
 0x3d7   :  { %v1388_v16 = vpop.f32.mrb[11].mxu1  ;;  %v545_v17 = vsel %vm152_vm2, %v243_v12, -inf }
 0x3d8   :  { %v340_v18 = vpop.f32.mrb[0].mxu0  ;;  %546 = vmax.xlane.f32.xlu1 %v545_v17 }
 0x3d9   :  { %v341_v19 = vadd.f32 %v340_v18, %v31_v4  ;;  %v1399_v20 = vpop.f32.mrb[1].mxu0 }
 0x3da   :  { %v343_v21 = vpop.f32.mrb[2].mxu0 }
 0x3db   :  { %v1400_v22 = vpop.f32.mrb[3].mxu0  ;;  %v551_v23 = vsel %vm152_vm2, %v341_v19, -inf }
 0x3dc   :  { %552 = vmax.xlane.f32.xlu0 %v551_v23  ;;  %v291_v24 = vpop.f32.mrb[12].mxu1 }
 0x3dd   :  { %v292_v25 = vadd.f32 %v291_v24, %v31_v4  ;;  %v1393_v26 = vpop.f32.mrb[13].mxu1 }
 0x3de   :  { %v294_v27 = vpop.f32.mrb[14].mxu1 }
 0x3df   :  { %v1394_v28 = vpop.f32.mrb[15].mxu1  ;;  %v548_v29 = vsel %vm152_vm2, %v292_v25, -inf }
 0x3e0   :  { %v438_v30 = vpop.f32.mrb[4].mxu0  ;;  %549 = vmax.xlane.f32.xlu0 %v548_v29 }
 0x3e1   :  { %v1725_v31 = vadd.f32 %v438_v30, %v31_v4  ;;  %v1411_v33 = vpop.f32.mrb[5].mxu0 }
 0x3e2   :  { %v441_v34 = vpop.f32.mrb[6].mxu0 }
 0x3e3   :  { %v1412_v37 = vpop.f32.mrb[7].mxu0  ;;  %v557_v38 = vsel %vm152_vm2, %v1725_v31, -inf }
 0x3e4   :  { %558 = vmax.xlane.f32.xlu1 %v557_v38  ;;  %v389_v41 = vpop.f32.mrb[16].mxu1 }
 0x3e5   :  { %v1729_v42 = vadd.f32 %v389_v41, %v31_v4  ;;  %v1405_v44 = vpop.f32.mrb[17].mxu1 }
 0x3e6   :  { %v392_v46 = vpop.f32.mrb[18].mxu1 }
 0x3e7   :  { %v1406_v48 = vpop.f32.mrb[19].mxu1  ;;  %v554_v49 = vsel %vm152_vm2, %v1729_v42, -inf }
 0x3e8   :  { %v536_v50 = vpop.f32.mrb[8].mxu0  ;;  %555 = vmax.xlane.f32.xlu0 %v554_v49 }
 0x3e9   :  { %v1733_v51 = vadd.f32 %v536_v50, %v31_v4  ;;  %v1423_v52 = vpop.f32.mrb[9].mxu0 }
 0x3ea   :  { %v539_v53 = vpop.f32.mrb[10].mxu0 }
 0x3eb   :  { %v1424_v54 = vpop.f32.mrb[11].mxu0  ;;  %v563_v55 = vsel %vm152_vm2, %v1733_v51, -inf }
 0x3ec   :  { %564 = vmax.xlane.f32.xlu1 %v563_v55  ;;  %v487_v56 = vpop.f32.mrb[20].mxu1 }
 0x3ed   :  { %v1737_v57 = vadd.f32 %v487_v56, %v31_v4  ;;  %v1417_v58 = vpop.f32.mrb[21].mxu1 }
 0x3ee   :  { %v490_v59 = vpop.f32.mrb[22].mxu1 }
 0x3ef   :  { %v1418_v60 = vpop.f32.mrb[23].mxu1  ;;  %v560_v61 = vsel %vm152_vm2, %v1737_v57, -inf }
 0x3f0   :  { %561 = vmax.xlane.f32.xlu0 %v560_v61 }
 0x3f8   :  { %v544_v62 = vpop.xlane.xlu0 %543 }
 0x3f9   :  { %v566_v63 = vsub.f32 %v194_v6, %v544_v62 }
 0x3fb   :  { %v574_v2 = vmul.f32 1.442695, %v566_v63 }
 0x3fd   :  { %687 = vrot.lane.b32.xlu1 %v1654_v36, %s1575_s7  ;;  %1528 = vpow2.f32 %v574_v2 }
 0x401   :  { %735 = vrot.lane.b32.xlu1 %v1652_v35, %s1575_s7 }
 0x405   :  { %783 = vrot.lane.b32.xlu1 %v1658_v39, %s1575_s7 }
 0x406   :  { %638 = vrot.lane.b32.xlu0 %v1649_v32, %s1575_s7 }
 0x407   :  { %v1749_v3 = vpop.eup %1528 }
 0x408   :  { %v590_v4 = vsel %vm152_vm2, %v1749_v3, 0.0 }
 0x425   :  { %591 = vadd.xlane.f32.xlu0 %v590_v4 }
 0x465   :  { %v547_v36 = vpop.xlane.xlu1 %546 }
 0x466   :  { %v567_v5 = vsub.f32 %v243_v12, %v547_v36 }
 0x468   :  { %v576_v7 = vmul.f32 1.442695, %v567_v5 }
 0x469   :  { %v553_v35 = vpop.xlane.xlu0 %552 }
 0x46a   :  { %1530 = vpow2.f32 %v576_v7  ;;  %v569_v8 = vsub.f32 %v341_v19, %v553_v35 }
 0x46c   :  { %v580_v39 = vmul.f32 1.442695, %v569_v8 }
 0x46d   :  { %v550_v9 = vpop.xlane.xlu0 %549 }
 0x46e   :  { %1532 = vpow2.f32 %v580_v39  ;;  %v568_v32 = vsub.f32 %v292_v25, %v550_v9 }
 0x470   :  { %v578_v10 = vmul.f32 1.442695, %v568_v32 }
 0x471   :  { %v559_v11 = vpop.xlane.xlu1 %558 }
 0x472   :  { %1534 = vpow2.f32 %v578_v10  ;;  %v571_v25 = vsub.f32 %v1725_v31, %v559_v11 }
 0x474   :  { %v1753_v6 = vpop.eup %1530  ;;  %v584_v27 = vmul.f32 1.442695, %v571_v25 }
 0x475   :  { %v593_v13 = vsel %vm152_vm2, %v1753_v6, 0.0  ;;  %v556_v12 = vpop.xlane.xlu0 %555 }
 0x476   :  { %594 = vadd.xlane.f32.xlu1 %v593_v13  ;;  %v570_v26 = vsub.f32 %v1729_v42, %v556_v12  ;;  %1536 = vpow2.f32 %v584_v27 }
 0x478   :  { %v1757_v15 = vpop.eup %1532  ;;  %v582_v29 = vmul.f32 1.442695, %v570_v26 }
 0x479   :  { %v565_v16 = vpop.xlane.xlu1 %564  ;;  %v599_v17 = vsel %vm152_vm2, %v1757_v15, 0.0 }
 0x47a   :  { %600 = vadd.xlane.f32.xlu1 %v599_v17  ;;  %v573_v28 = vsub.f32 %v1733_v51, %v565_v16  ;;  %1538 = vpow2.f32 %v582_v29 }
 0x47c   :  { %v1761_v18 = vpop.eup %1534  ;;  %v588_v30 = vmul.f32 1.442695, %v573_v28 }
 0x47d   :  { %v688_v19 = vpop.permute.xlu1 %687  ;;  %v562_v20 = vpop.xlane.xlu0 %561  ;;  %v596_v21 = vsel %vm152_vm2, %v1761_v18, 0.0 }
 0x47e   :  { %v693_v22 = vsel %vm643_vm4, %v688_v19, 0  ;;  %597 = vadd.xlane.f32.xlu0 %v596_v21  ;;  %v572_v33 = vsub.f32 %v1737_v57, %v562_v20  ;;  %1540 = vpow2.f32 %v588_v30 }
 0x47f   :  { %1432 = vmatpush3.bf16.msra.mxu0 %v693_v22 }
 0x480   :  { %1443 = vmatprep.subr.bf16.mxu0 %v1568_v14  ;;  %v586_v34 = vmul.f32 1.442695, %v572_v33 }
 0x481   :  { %v639_v23 = vpop.permute.xlu0 %638  ;;  %v736_v50 = vpop.permute.xlu1 %735 }
 0x482   :  { %v645_v24 = vsel %vm643_vm4, %v639_v23, 0  ;;  %1542 = vpow2.f32 %v586_v34  ;;  %v741_v52 = vsel %vm643_vm4, %v736_v50, 0 }
 0x483   :  { %1426 = vmatpush3.bf16.msra.mxu1 %v645_v24 }
 0x484   :  { %1437 = vmatprep.subr.bf16.mxu1 %v1568_v14 }
 0x485   :  { %v784_v53 = vpop.permute.xlu1 %783 }
 0x486   :  { %v789_v61 = vsel %vm643_vm4, %v784_v53, 0 }
 0x48b   :  { %879 = vrot.lane.b32.xlu1 %v1667_v45, %s1575_s7  ;;  %v1777_v45 = vpop.eup %1536 }
 0x48c   :  { %v1779_v37 = vpop.eup %1538 }
 0x48d   :  { %v1783_v31 = vpop.eup %1540  ;;  %v602_v42 = vsel %vm152_vm2, %v1779_v37, 0.0 }
 0x48e   :  { %v611_v41 = vsel %vm152_vm2, %v1783_v31, 0.0  ;;  %v1789_v44 = vpop.eup %1542 }
 0x48f   :  { %v608_v46 = vsel %vm152_vm2, %v1789_v44, 0.0 }
 0x494   :  { %831 = vrot.lane.b32.xlu0 %v1660_v40, %s1575_s7  ;;  %v605_v40 = vsel %vm152_vm2, %v1777_v45, 0.0 }
 0x4af   :  { %606 = vadd.xlane.f32.xlu1 %v605_v40 }
 0x4b2   :  { %v592_v38 = vpop.xlane.xlu0 %591 }
 0x4b3   :  { %1544 = vrcp.f32 %v592_v38  ;;  %612 = vadd.xlane.f32.xlu1 %v611_v41  ;;  %603 = vadd.xlane.f32.xlu0 %v602_v42 }
 0x4b7   :  { %609 = vadd.xlane.f32.xlu0 %v608_v46 }
 0x4bd   :  { %v1545_v48 = vpop.eup %1544 }
 0x4be   :  { %v622_v49 = vmul.f32 %v1545_v48, %v1749_v3 }
 0x4c0   :  { %v630_v51 = vpack.c.bf16 %v622_v49, %v622_v49 }
 0x4c2   :  { %1428 = vmatmul.mubr.msk.bf16.vlgmr.msra.gmra.mrb[24].mxu1 %vm152_vm2, %v630_v51 }
 0x4c3   :  { %1438 = vmatpush3.bf16.msra.mxu1 %v741_v52  ;;  %1439 = vmatprep.mubr.msk.bf16.mxu1 %vm1569_vm1, %v1568_v14 }
 0x4c4   :  { %975 = vrot.lane.b32.xlu1 %v1672_v47, %s1575_s7  ;;  %1449 = vmatprep.subr.bf16.mxu1 %v1568_v14 }
 0x4cd   :  { %927 = vrot.lane.b32.xlu0 %v1664_v43, %s1575_s7 }
 0x503   :  { %v595_v54 = vpop.xlane.xlu1 %594 }
 0x504   :  { %1546 = vrcp.f32 %v595_v54 }
 0x507   :  { %v601_v55 = vpop.xlane.xlu1 %600 }
 0x508   :  { %1548 = vrcp.f32 %v601_v55 }
 0x50b   :  { %v598_v56 = vpop.xlane.xlu0 %597  ;;  %v880_v63 = vpop.permute.xlu1 %879 }
 0x50c   :  { %1550 = vrcp.f32 %v598_v56  ;;  %v885_v36 = vsel %vm643_vm4, %v880_v63, 0 }
 0x50e   :  { %v1547_v57 = vpop.eup %1546 }
 0x50f   :  { %v623_v58 = vmul.f32 %v1547_v57, %v1753_v6  ;;  %v832_v2 = vpop.permute.xlu0 %831 }
 0x510   :  { %v837_v5 = vsel %vm643_vm4, %v832_v2, 0 }
 0x511   :  { %v631_v59 = vpack.c.bf16 %v623_v58, %v623_v58 }
 0x512   :  { %v1549_v60 = vpop.eup %1548 }
 0x513   :  { %1434 = vmatmul.mubr.msk.bf16.vlgmr.msra.gmra.mrb[12].mxu0 %vm152_vm2, %v631_v59  ;;  %v625_v43 = vmul.f32 %v1549_v60, %v1757_v15 }
 0x514   :  { %1444 = vmatpush3.bf16.msra.mxu0 %v789_v61  ;;  %1445 = vmatprep.mubr.msk.bf16.mxu0 %vm1569_vm1, %v1568_v14 }
 0x515   :  { %1455 = vmatprep.subr.bf16.mxu0 %v1568_v14  ;;  %v633_v4 = vpack.c.bf16 %v625_v43, %v625_v43 }
 0x516   :  { %v1551_v47 = vpop.eup %1550 }
 0x517   :  { %v624_v62 = vmul.f32 %v1551_v47, %v1761_v18 }
 0x519   :  { %v632_v3 = vpack.c.bf16 %v624_v62, %v624_v62 }
 0x51b   :  { %1440 = vmatmul.mubr.msk.bf16.vlgmr.msra.gmra.mrb[28].mxu1 %vm152_vm2, %v632_v3  ;;  %1446 = vmatmul.mubr.msk.bf16.vlgmr.msra.gmra.mrb[16].mxu0 %vm152_vm2, %v633_v4 }
 0x51c   :  { %1450 = vmatpush3.bf16.msra.mxu1 %v837_v5  ;;  %1456 = vmatpush3.bf16.msra.mxu0 %v885_v36 }
 0x51d   :  { %1457 = vmatprep.mubr.msk.bf16.mxu0 %vm1569_vm1, %v1568_v14  ;;  %1467 = vmatprep.subr.bf16.mxu0 %v1568_v14 }
 0x51e   :  { %1451 = vmatprep.mubr.msk.bf16.mxu1 %vm1569_vm1, %v1568_v14  ;;  %1461 = vmatprep.subr.bf16.mxu1 %v1568_v14 }
 0x53c   :  { %v607_v7 = vpop.xlane.xlu1 %606 }
 0x53d   :  { %1552 = vrcp.f32 %v607_v7 }
 0x540   :  { %v613_v35 = vpop.xlane.xlu1 %612  ;;  %v604_v8 = vpop.xlane.xlu0 %603 }
 0x541   :  { %1554 = vrcp.f32 %v613_v35 }
 0x542   :  { %1556 = vrcp.f32 %v604_v8 }
 0x544   :  { %v610_v39 = vpop.xlane.xlu0 %609  ;;  %v976_v10 = vpop.permute.xlu1 %975 }
 0x545   :  { %1558 = vrcp.f32 %v610_v39  ;;  %v981_v15 = vsel %vm643_vm4, %v976_v10, 0 }
 0x547   :  { %v1553_v9 = vpop.eup %1552 }
 0x548   :  { %v627_v32 = vmul.f32 %v1553_v9, %v1777_v45  ;;  %v928_v17 = vpop.permute.xlu0 %927 }
 0x549   :  { %v933_v20 = vsel %vm643_vm4, %v928_v17, 0 }
 0x54a   :  { %v635_v6 = vpack.c.bf16 %v627_v32, %v627_v32 }
 0x54b   :  { %v1555_v11 = vpop.eup %1554 }
 0x54c   :  { %v1557_v13 = vpop.eup %1556  ;;  %1458 = vmatmul.mubr.msk.bf16.vlgmr.msra.gmra.mrb[20].mxu0 %vm152_vm2, %v635_v6  ;;  %v629_v16 = vmul.f32 %v1555_v11, %v1783_v31 }
 0x54d   :  { %v626_v12 = vmul.f32 %v1557_v13, %v1779_v37  ;;  %1468 = vmatpush3.bf16.msra.mxu0 %v981_v15  ;;  %1469 = vmatprep.mubr.msk.bf16.mxu0 %vm1569_vm1, %v1568_v14 }
 0x54e   :  { %1481 = vmatprep.subr.bf16.mxu0 %v1568_v14  ;;  %v637_v21 = vpack.c.bf16 %v629_v16, %v629_v16 }
 0x54f   :  { %v634_v18 = vpack.c.bf16 %v626_v12, %v626_v12  ;;  %v1559_v19 = vpop.eup %1558 }
 0x550   :  { %v628_v22 = vmul.f32 %v1559_v19, %v1789_v44  ;;  %v1514_v19 = vld [vmem:[%s1914_s2] sm:$0xff]  }
 0x551   :  { %1452 = vmatmul.mubr.msk.bf16.vlgmr.msra.gmra.mrb[32].mxu1 %vm152_vm2, %v634_v18 }
 0x552   :  { %1462 = vmatpush3.bf16.msra.mxu1 %v933_v20  ;;  %1463 = vmatprep.mubr.msk.bf16.mxu1 %vm1569_vm1, %v1568_v14  ;;  %v636_v23 = vpack.c.bf16 %v628_v22, %v628_v22  ;;  %v1515_v20 = vld [vmem:[%s1914_s2 + $0x8] sm:$0xff]  }
 0x553   :  { %1473 = vmatprep.subr.bf16.mxu1 %v1568_v14 }
 0x554   :  { %1470 = vmatmul.mubr.msk.bf16.vlgmr.msra.gmra.mrb[24].mxu0 %vm152_vm2, %v637_v21 }
 0x555   :  { %1497 = vmatprep.mubr.msk.bf16.mxu0 %vm1569_vm1, %v1568_v14 }
 0x559   :  { %1464 = vmatmul.mubr.msk.bf16.vlgmr.msra.gmra.mrb[36].mxu1 %vm152_vm2, %v636_v23 }
 0x55a   :  { %1477 = vmatprep.mubr.msk.bf16.mxu1 %vm1569_vm1, %v1568_v14  ;;  %1474 = vmatpush3.bf16.msra.mxu1 %v1514_v19 }
 0x55b   :  { %1475 = vmatprep.subr.bf16.mxu1 %v1568_v14 }
 0x55e   :  { %1476 = vmatpush3.bf16.msra.mxu1 %v1515_v20 }
 0x595   :  { %v681_v24 = vpop.f32.mrb[24].mxu1 }
 0x596   :  { %v1429_v25 = vpop.f32.mrb[25].mxu1 }
 0x597   :  { %v684_v26 = vpop.f32.mrb[26].mxu1 }
 0x598   :  { %v1430_v27 = vpop.f32.mrb[27].mxu1 }
 0x5e6   :  { %v729_v28 = vpop.f32.mrb[12].mxu0 }
 0x5e7   :  { %v1435_v29 = vpop.f32.mrb[13].mxu0  ;;  %1024 = vrot.lane.b32.xlu0 %v729_v28, %s1576_s8 }
 0x5e8   :  { %v732_v30 = vpop.f32.mrb[14].mxu0 }
 0x5e9   :  { %v1436_v33 = vpop.f32.mrb[15].mxu0 }
 0x5ee   :  { %v777_v34 = vpop.f32.mrb[28].mxu1  ;;  %v825_v45 = vpop.f32.mrb[16].mxu0 }
 0x5ef   :  { %v1447_v37 = vpop.f32.mrb[17].mxu0  ;;  %1028 = vrot.lane.b32.xlu0 %v777_v34, %s1577_s9  ;;  %v1441_v40 = vpop.f32.mrb[29].mxu1  ;;  %v1516_v34 = vld [vmem:[%s1915_s4] sm:$0xff]  }
 0x5f0   :  { %v780_v31 = vpop.f32.mrb[30].mxu1  ;;  %v828_v38 = vpop.f32.mrb[18].mxu0  ;;  %1482 = vmatpush3.bf16.msra.mxu0 %v1516_v34  ;;  %v1518_v37 = vld [vmem:[%s1915_s4 + $0x10] sm:$0xff]   ;;  %v1519_v40 = vld [vmem:[%s1915_s4 + $0x18] sm:$0xff]  }
 0x5f1   :  { %v1442_v41 = vpop.f32.mrb[31].mxu1  ;;  %v1448_v42 = vpop.f32.mrb[19].mxu0  ;;  %1483 = vmatprep.subr.bf16.mxu0 %v1568_v14  ;;  %v1520_v31 = vld [vmem:[%s1915_s4 + $0x20] sm:$0xff]   ;;  %v1521_v38 = vld [vmem:[%s1915_s4 + $0x28] sm:$0xff]  }
 0x5f2   :  { %v1522_v41 = vld [vmem:[%s1915_s4 + $0x30] sm:$0xff]   ;;  %v1523_v42 = vld [vmem:[%s1915_s4 + $0x38] sm:$0xff]  }
 0x5f3   :  { %1032 = vrot.lane.b32.xlu0 %v825_v45, %s1578_s10  ;;  %v1517_v45 = vld [vmem:[%s1915_s4 + $0x8] sm:$0xff]  }
 0x5f4   :  { %1484 = vmatpush3.bf16.msra.mxu0 %v1517_v45 }
 0x5f5   :  { %1485 = vmatprep.subr.bf16.mxu0 %v1568_v14 }
 0x5f8   :  { %1486 = vmatpush3.bf16.msra.mxu0 %v1518_v37 }
 0x5f9   :  { %1487 = vmatprep.subr.bf16.mxu0 %v1568_v14 }
 0x5fc   :  { %1488 = vmatpush3.bf16.msra.mxu0 %v1519_v40 }
 0x5fd   :  { %1489 = vmatprep.subr.bf16.mxu0 %v1568_v14 }
 0x600   :  { %1490 = vmatpush3.bf16.msra.mxu0 %v1520_v31 }
 0x601   :  { %1491 = vmatprep.subr.bf16.mxu0 %v1568_v14 }
 0x604   :  { %1492 = vmatpush3.bf16.msra.mxu0 %v1521_v38 }
 0x605   :  { %1493 = vmatprep.subr.bf16.mxu0 %v1568_v14 }
 0x608   :  { %1494 = vmatpush3.bf16.msra.mxu0 %v1522_v41 }
 0x609   :  { %1495 = vmatprep.subr.bf16.mxu0 %v1568_v14 }
 0x60c   :  { %1496 = vmatpush3.bf16.msra.mxu0 %v1523_v42 }
 0x61f   :  { %v921_v44 = vpop.f32.mrb[20].mxu0 }
 0x620   :  { %1041 = vrot.lane.b32.xlu1 %v921_v44, %s1576_s8  ;;  %v1459_v46 = vpop.f32.mrb[21].mxu0  ;;  %v1309_v44 = vld [vmem:[%s1916_s3] ss:$0 sm:$0xff] }
 0x621   :  { %v924_v48 = vpop.f32.mrb[22].mxu0 }
 0x622   :  { %v1460_v49 = vpop.f32.mrb[23].mxu0 }
 0x624   :  { %v873_v50 = vpop.f32.mrb[32].mxu1 }
 0x625   :  { %v1453_v51 = vpop.f32.mrb[33].mxu1 }
 0x626   :  { %v876_v52 = vpop.f32.mrb[34].mxu1 }
 0x627   :  { %v1454_v53 = vpop.f32.mrb[35].mxu1  ;;  %v1017_v54 = vpop.f32.mrb[24].mxu0 }
 0x628   :  { %v1471_v55 = vpop.f32.mrb[25].mxu0 }
 0x629   :  { %v1020_v56 = vpop.f32.mrb[26].mxu0 }
 0x62a   :  { %v1472_v57 = vpop.f32.mrb[27].mxu0 }
 0x62c   :  { %v969_v58 = vpop.f32.mrb[36].mxu1 }
 0x62d   :  { %1045 = vrot.lane.b32.xlu1 %v969_v58, %s1577_s9  ;;  %v1465_v59 = vpop.f32.mrb[37].mxu1 }
 0x62e   :  { %v972_v60 = vpop.f32.mrb[38].mxu1 }
 0x62f   :  { %v1466_v61 = vpop.f32.mrb[39].mxu1 }
 0x631   :  { %1049 = vrot.lane.b32.xlu1 %v1017_v54, %s1578_s10 }
 0x659   :  { %v1025_v43 = vpop.permute.xlu0 %1024 }
 0x65a   :  { %v1035_v62 = vsel %vm152_vm2, %v681_v24, %v1025_v43 }
 0x661   :  { %v1029_v47 = vpop.permute.xlu0 %1028 }
 0x662   :  { %v1037_v63 = vsel %vm1036_vm5, %v1035_v62, %v1029_v47 }
 0x665   :  { %v1033_v2 = vpop.permute.xlu0 %1032 }
 0x666   :  { %v1039_v3 = vsel %vm1038_vm6, %v1037_v63, %v1033_v2 }
 0x667   :  { %v1843_v4 = vadd.f32 %v1039_v3, %v1617_v0 }
 0x669   :  { %v1057_v36 = vsel %vm32_vm0, %v1843_v4, 0.0 }
 0x66a   :  { %1058 = vadd.xlane.f32.xlu0 %v1057_v36 }
 0x692   :  { %v1042_v5 = vpop.permute.xlu1 %1041 }
 0x693   :  { %v1052_v35 = vsel %vm152_vm2, %v873_v50, %v1042_v5 }
 0x69f   :  { %v1046_v7 = vpop.permute.xlu1 %1045 }
 0x6a0   :  { %v1053_v8 = vsel %vm1036_vm5, %v1052_v35, %v1046_v7  ;;  %v1313_v35 = vld [vmem:[%s1917_s5] ss:$0 sm:$0xff] }
 0x6a3   :  { %v1050_v39 = vpop.permute.xlu1 %1049 }
 0x6a4   :  { %v1054_v9 = vsel %vm1038_vm6, %v1053_v8, %v1050_v39 }
 0x6a5   :  { %v1849_v32 = vadd.f32 %v1054_v9, %v1622_v1 }
 0x6a7   :  { %v1060_v10 = vsel %vm32_vm0, %v1849_v32, 0.0 }
 0x6a8   :  { %1061 = vadd.xlane.f32.xlu1 %v1060_v10 }
 0x6f7   :  { %v1059_v0 = vpop.xlane.xlu0 %1058 }
 0x6f8   :  { %v1063_v6 = vmul.f32 0.03125, %v1059_v0 }
 0x6fa   :  { %v1065_v11 = vsub.f32 %v1843_v4, %v1063_v6 }
 0x6fc   :  { %v1067_v13 = vmul.f32 %v1065_v11, %v1065_v11 }
 0x6fe   :  { %v1069_v15 = vsel %vm32_vm0, %v1067_v13, 0.0 }
 0x6ff   :  { %1070 = vadd.xlane.f32.xlu0 %v1069_v15 }
 0x735   :  { %v1062_v12 = vpop.xlane.xlu1 %1061 }
 0x736   :  { %v1064_v16 = vmul.f32 0.03125, %v1062_v12 }
 0x738   :  { %v1066_v17 = vsub.f32 %v1849_v32, %v1064_v16 }
 0x73a   :  { %v1068_v18 = vmul.f32 %v1066_v17, %v1066_v17 }
 0x73c   :  { %v1072_v1 = vsel %vm32_vm0, %v1068_v18, 0.0 }
 0x73d   :  { %1073 = vadd.xlane.f32.xlu0 %v1072_v1 }
 0x78c   :  { %v1071_v21 = vpop.xlane.xlu0 %1070 }
 0x78d   :  { %v1075_v22 = vmul.f32 0.03125, %v1071_v21 }
 0x78f   :  { %v1077_v23 = vadd.f32 1e-05, %v1075_v22 }
 0x791   :  { %1560 = vrsqrt.f32 %v1077_v23 }
 0x79b   :  { %v1561_v27 = vpop.eup %1560 }
 0x79c   :  { %v1081_v29 = vmul.f32 %v1561_v27, %v1065_v11 }
 0x7ca   :  { %v1074_v24 = vpop.xlane.xlu0 %1073 }
 0x7cb   :  { %v1076_v25 = vmul.f32 0.03125, %v1074_v24 }
 0x7cd   :  { %v1078_v26 = vadd.f32 1e-05, %v1076_v25 }
 0x7cf   :  { %1562 = vrsqrt.f32 %v1078_v26 }
 0x7d9   :  { %v1563_v28 = vpop.eup %1562 }
 0x7da   :  { %v1082_v30 = vmul.f32 %v1563_v28, %v1066_v17 }
 0x7dc   :  { %v1083_v33 = vpack.c.bf16 %v1082_v30, %v1081_v29 }
 0x7de   :  { %1478 = vmatmul.mubr.msk.bf16.vlgmr.msra.gmra.mrb[40].mxu1 %vm32_vm0, %v1083_v33 }
 0x8b1   :  { %v1144_v46 = vpop.f32.mrb[40].mxu1 }
 0x8b2   :  { %v1145_v48 = vadd.f32 %v1309_v44, %v1144_v46  ;;  %v1479_v49 = vpop.f32.mrb[41].mxu1 }
 0x8b3   :  { %v1147_v50 = vpop.f32.mrb[42].mxu1 }
 0x8b4   :  { %v1153_v51 = vmul.f32 %v1145_v48, %v1145_v48  ;;  %v1148_v52 = vadd.f32 %v1309_v44, %v1147_v50  ;;  %v1480_v53 = vpop.f32.mrb[43].mxu1  ;;  %v1151_v63 = vmul.f32 0.5, %v1145_v48 }
 0x8b6   :  { %v1155_v54 = vmul.f32 %v1153_v51, %v1145_v48  ;;  %v1154_v55 = vmul.f32 %v1148_v52, %v1148_v52  ;;  %v1152_v2 = vmul.f32 0.5, %v1148_v52 }
 0x8b8   :  { %v1157_v56 = vmul.f32 0.044715, %v1155_v54  ;;  %v1156_v57 = vmul.f32 %v1154_v55, %v1148_v52 }
 0x8ba   :  { %v1159_v58 = vadd.f32 %v1157_v56, %v1145_v48  ;;  %v1158_v59 = vmul.f32 0.044715, %v1156_v57 }
 0x8bc   :  { %v1161_v60 = vmul.f32 0.7978846, %v1159_v58  ;;  %v1160_v14 = vadd.f32 %v1158_v59, %v1148_v52 }
 0x8be   :  { %1564 = vtanh.f32 %v1161_v60  ;;  %v1162_v61 = vmul.f32 0.7978846, %v1160_v14 }
 0x8c0   :  { %1566 = vtanh.f32 %v1162_v61 }
 0x8c8   :  { %v1565_v43 = vpop.eup %1564 }
 0x8c9   :  { %v1165_v47 = vadd.f32 1.0, %v1565_v43 }
 0x8ca   :  { %v1567_v62 = vpop.eup %1566 }
 0x8cb   :  { %v1166_v3 = vadd.f32 1.0, %v1567_v62  ;;  %v1167_v36 = vmul.f32 %v1165_v47, %v1151_v63 }
 0x8cd   :  { %v1168_v5 = vmul.f32 %v1166_v3, %v1152_v2 }
 0x8cf   :  { %v1169_v7 = vpack.c.bf16 %v1168_v5, %v1167_v36 }
 0x8d1   :  { %1498 = vmatmul.mubr.bf16.vlgmr.msra.gmra.mrb[28].mxu0 %v1169_v7 }
 0x9a4   :  { %v1275_v8 = vpop.f32.mrb[28].mxu0 }
 0x9a5   :  { %v1276_v39 = vadd.f32 %v1313_v35, %v1275_v8  ;;  %v1499_v9 = vpop.f32.mrb[29].mxu0 }
 0x9a6   :  { %v1278_v10 = vpop.f32.mrb[30].mxu0 }
 0x9a7   :  { %v1282_v0 = vadd.f32 %v1276_v39, %v1843_v4  ;;  %v1279_v6 = vadd.f32 %v1313_v35, %v1278_v10  ;;  %v1500_v11 = vpop.f32.mrb[31].mxu0 }
 0x9a9   :  { %1284 = vst.msk [vmem:[%s1918_s6] sm:$0xff] %vm32_vm0, %v1282_v0  ;;  %v1283_v13 = vadd.f32 %v1279_v6, %v1849_v32 }
 0x9ab   :  { %1285 = vst.msk [vmem:[%s1918_s6 + $0x8] sm:$0xff] %vm32_vm0, %v1283_v13 }

</bundles_post_ra>
